<compile_context>
chip_gen: v5e
topology: v5e:2x2
jax: 0.10.0
libtpu: 0.0.40
codegen_flags: <defaults>
</compile_context>

<pallas_src>
import functools

import jax
import jax.numpy as jnp
from jax.experimental import pallas as pl
from jax.experimental.pallas import tpu as pltpu


def _chunk(total, target):
    """Largest chunk size <= target that divides `total`."""
    t = max(1, min(target, total))
    while total % t:
        t -= 1
    return t


# ----------------------------------------------------------------------------
# Fused bidirectional LSTM.
#   grid = (direction, time-chunk).  Per grid step: one chunk-level input
#   projection matmul, then an unrolled recurrence over the chunk.
#   Output shape (2, T, B, H): [0] = forward hidden, [1] = backward hidden.
# ----------------------------------------------------------------------------
def _bilstm_kernel(x_ref, wih_ref, whh_ref, b_ref, out_ref,
                   gx_ref, h_ref, c_ref, *, hidden, tc):
    d = pl.program_id(0)        # direction: 0 = forward, 1 = backward
    blk = pl.program_id(1)      # time chunk

    @pl.when(blk == 0)
    def _():
        h_ref[...] = jnp.zeros_like(h_ref)
        c_ref[...] = jnp.zeros_like(c_ref)

    B = x_ref.shape[1]
    E = x_ref.shape[2]
    H4 = 4 * hidden

    # Hoisted input projection: one matmul per chunk (not per timestep).
    x2d = x_ref[...].reshape(tc * B, E)
    gx_ref[...] = (jnp.dot(x2d, wih_ref[...], preferred_element_type=jnp.float32)
                   + b_ref[...]).reshape(tc, B, H4)

    whh = whh_ref[...]          # (H, 4H)

    def step(lt, carry):
        # backward direction walks the chunk in reverse local order
        lt_eff = lt + d * (tc - 1 - 2 * lt)
        gates = gx_ref[lt_eff] + jnp.dot(h_ref[...], whh,
                                         preferred_element_type=jnp.float32)
        # NOTE: gate slices are not 128-lane aligned for small H (perf micro-opt
        # only; correctness unaffected).
        i_g = jax.nn.sigmoid(gates[:, 0 * hidden:1 * hidden])
        f_g = jax.nn.sigmoid(gates[:, 1 * hidden:2 * hidden])
        g_g = jnp.tanh(gates[:, 2 * hidden:3 * hidden])
        o_g = jax.nn.sigmoid(gates[:, 3 * hidden:4 * hidden])
        c_new = f_g * c_ref[...] + i_g * g_g
        h_new = o_g * jnp.tanh(c_new)
        c_ref[...] = c_new
        h_ref[...] = h_new
        out_ref[lt_eff] = h_new
        return carry

    jax.lax.fori_loop(0, tc, step, 0, unroll=True)


def bilstm(embeds, w_ih, w_hh, bias, hidden, *, tc=8):
    T, B, E = embeds.shape
    tc = _chunk(T, tc)
    nc = T // tc
    H4 = 4 * hidden

    def tmap(d, blk):           # forward: blk ; backward: nc-1-blk
        return blk + d * (nc - 1 - 2 * blk)

    return pl.pallas_call(
        functools.partial(_bilstm_kernel, hidden=hidden, tc=tc),
        out_shape=jax.ShapeDtypeStruct((2, T, B, hidden), jnp.float32),
        grid=(2, nc),
        in_specs=[
            pl.BlockSpec((tc, B, E), lambda d, blk: (tmap(d, blk), 0, 0)),
            pl.BlockSpec((None, E, H4), lambda d, blk: (d, 0, 0)),
            pl.BlockSpec((None, hidden, H4), lambda d, blk: (d, 0, 0)),
            pl.BlockSpec((None, 1, H4), lambda d, blk: (d, 0, 0)),
        ],
        out_specs=pl.BlockSpec((None, tc, B, hidden),
                               lambda d, blk: (d, tmap(d, blk), 0, 0)),
        scratch_shapes=[pltpu.VMEM((tc, B, H4), jnp.float32),   # chunk input gates
                        pltpu.VMEM((B, hidden), jnp.float32),   # h state
                        pltpu.VMEM((B, hidden), jnp.float32)],  # c state
        compiler_params=pltpu.CompilerParams(
            dimension_semantics=("parallel", "arbitrary")),
    )(embeds, w_ih, w_hh, bias)


# ----------------------------------------------------------------------------
# CRF log-likelihood (torchcrf semantics, reduction='sum') with the hidden2tag
# linear fused in.  Tiled over time blocks; forward-algorithm state carried in
# VMEM scratch across blocks.
# ----------------------------------------------------------------------------
def _crf_kernel(lstm_ref, wtag_ref, btag_ref, tags_ref, mask_ref,
                transT_ref, start_ref, end_ref, out_ref,
                em_ref, score_ref, alpha_ref, last_ref, prev_ref, *, tc):
    blk = pl.program_id(0)
    nblk = pl.num_programs(0)
    K = transT_ref.shape[0]
    B = tags_ref.shape[1]
    H = lstm_ref.shape[3]

    trans_t = transT_ref[...]   # trans_t[j, i] = transitions[i, j]
    start = start_ref[...]      # (1, K)
    end = end_ref[...]          # (1, K)

    # Fused hidden2tag: emissions for this time block (forward + backward halves).
    h_f = lstm_ref[0].reshape(tc * B, H)
    h_b = lstm_ref[1].reshape(tc * B, H)
    em = (jnp.dot(h_f, wtag_ref[0], preferred_element_type=jnp.float32)
          + jnp.dot(h_b, wtag_ref[1], preferred_element_type=jnp.float32)
          + btag_ref[...])
    em_ref[...] = em.reshape(tc, B, K)

    @pl.when(blk == 0)
    def _():
        score_ref[...] = jnp.zeros_like(score_ref)
        alpha_ref[...] = jnp.zeros_like(alpha_ref)
        last_ref[...] = jnp.zeros_like(last_ref)
        prev_ref[...] = jnp.zeros_like(prev_ref)

    def step(lt, carry):
        score, alpha, last_oh, prev_oh = carry
        is_first = (blk * tc + lt) == 0

        em_t = em_ref[lt]                                           # (B, K)
        m_t = mask_ref[lt]                                          # (B, 1)
        tg_t = tags_ref[lt]                                         # (B, 1) int32
        oh_t = (tg_t == jax.lax.broadcasted_iota(jnp.int32, (B, K), 1)
                ).astype(jnp.float32)                               # (B, K)

        # Gold-path (numerator) score.
        emit = jnp.sum(oh_t * em_t, axis=-1, keepdims=True)         # (B, 1)
        # trans[prev_tag, tag] via dot(oh_t, trans_t)[b, i] = trans[i, tag_t[b]]
        tr = jnp.sum(prev_oh * jnp.dot(oh_t, trans_t,
                                       preferred_element_type=jnp.float32),
                     axis=-1, keepdims=True)                        # (B, 1)
        first_sc = jnp.sum(oh_t * start, axis=-1, keepdims=True) + emit
        score = score + jnp.where(is_first, first_sc, m_t * (emit + tr))

        # Forward recursion (log-partition): logsumexp over previous-tag axis i,
        # stabilized over the combined alpha + transition term.
        comb = alpha[:, None, :] + trans_t[None, :, :]              # (B, j, i)
        cmax = jnp.max(comb, axis=-1, keepdims=True)                # (B, j, 1)
        lse = jnp.log(jnp.sum(jnp.exp(comb - cmax), axis=-1)) + cmax[:, :, 0]
        alpha_rec = lse + em_t
        alpha_first = start + em_t
        alpha = jnp.where(is_first, alpha_first,
                          jnp.where(m_t > 0.0, alpha_rec, alpha))

        # One-hot of the tag at the most recent valid (masked) position.
        last_oh = jnp.where(m_t > 0.0, oh_t, last_oh)
        prev_oh = oh_t
        return score, alpha, last_oh, prev_oh

    carry0 = (score_ref[...], alpha_ref[...], last_ref[...], prev_ref[...])
    score, alpha, last_oh, prev_oh = jax.lax.fori_loop(0, tc, step, carry0,
                                                       unroll=True)
    score_ref[...] = score
    alpha_ref[...] = alpha
    last_ref[...] = last_oh
    prev_ref[...] = prev_oh

    @pl.when(blk == nblk - 1)
    def _():
        gold = score + jnp.sum(last_oh * end, axis=-1, keepdims=True)   # (B, 1)
        final = alpha + end                                             # (B, K)
        fmax = jnp.max(final, axis=-1, keepdims=True)
        logz = fmax + jnp.log(jnp.sum(jnp.exp(final - fmax), axis=-1,
                                      keepdims=True))                   # (B, 1)
        out_ref[...] = jnp.sum(gold - logz, keepdims=True)              # (1, 1)


def crf_loss(lstm_out, w_tag, b_tag, tags3, mask3, trans, start, end, *, tc=8):
    _, T, B, H = lstm_out.shape
    K = trans.shape[0]
    tc = _chunk(T, tc)
    nblk = T // tc
    trans_t = jnp.transpose(trans)      # pre-transposed transitions (glue)

    out = pl.pallas_call(
        functools.partial(_crf_kernel, tc=tc),
        out_shape=jax.ShapeDtypeStruct((1, 1), jnp.float32),
        grid=(nblk,),
        in_specs=[
            pl.BlockSpec((2, tc, B, H), lambda c: (0, c, 0, 0)),
            pl.BlockSpec((2, H, K), lambda c: (0, 0, 0)),
            pl.BlockSpec((1, K), lambda c: (0, 0)),
            pl.BlockSpec((tc, B, 1), lambda c: (c, 0, 0)),
            pl.BlockSpec((tc, B, 1), lambda c: (c, 0, 0)),
            pl.BlockSpec((K, K), lambda c: (0, 0)),
            pl.BlockSpec((1, K), lambda c: (0, 0)),
            pl.BlockSpec((1, K), lambda c: (0, 0)),
        ],
        out_specs=pl.BlockSpec((1, 1), lambda c: (0, 0)),
        scratch_shapes=[pltpu.VMEM((tc, B, K), jnp.float32),   # block emissions
                        pltpu.VMEM((B, 1), jnp.float32),       # gold score
                        pltpu.VMEM((B, K), jnp.float32),       # alpha
                        pltpu.VMEM((B, K), jnp.float32),       # last valid tag (one-hot)
                        pltpu.VMEM((B, K), jnp.float32)],      # previous tag (one-hot)
        compiler_params=pltpu.CompilerParams(
            dimension_semantics=("arbitrary",)),
    )(lstm_out, w_tag, b_tag, tags3, mask3, trans_t, start, end)
    return out[0, 0]


# ----------------------------------------------------------------------------
# Parameter init (deterministic, PyTorch-style distributions) + forward glue.
# ----------------------------------------------------------------------------
def init_params(key, vocab_size, tagset_size, embedding_dim, hidden_dim):
    H = hidden_dim // 2
    keys = jax.random.split(key, 16)

    def u(k, shape, bound):
        return jax.random.uniform(k, shape, jnp.float32, -bound, bound)

    lstm_b = 1.0 / jnp.sqrt(H)
    lin_b = 1.0 / jnp.sqrt(hidden_dim)
    return {
        "embedding": jax.random.normal(keys[0], (vocab_size, embedding_dim), jnp.float32),
        # stacked per-direction LSTM weights: dim 0 = (forward, backward)
        "w_ih": u(keys[1], (2, embedding_dim, 4 * H), lstm_b),
        "w_hh": u(keys[2], (2, H, 4 * H), lstm_b),
        "b": u(keys[3], (2, 1, 4 * H), lstm_b) + u(keys[4], (2, 1, 4 * H), lstm_b),
        # hidden2tag, split into forward-half / backward-half rows of (2H, K)
        "w_tag": u(keys[5], (2, H, tagset_size), lin_b),
        "b_tag": u(keys[6], (1, tagset_size), lin_b),
        # CRF params (torchcrf init: U(-0.1, 0.1))
        "start": u(keys[7], (1, tagset_size), 0.1),
        "end": u(keys[8], (1, tagset_size), 0.1),
        "transitions": u(keys[9], (tagset_size, tagset_size), 0.1),
    }


def lstm_crf_forward(params, sentences, sentence_masks, tags, tag_masks,
                     *, lstm_tc=4, crf_tc=4):
    hidden = params["w_hh"].shape[1]

    embeds = params["embedding"][sentences]                      # (T, B, E) gather (glue)
    lstm_out = bilstm(embeds, params["w_ih"], params["w_hh"], params["b"],
                      hidden, tc=lstm_tc)                        # (2, T, B, H)
    llh = crf_loss(lstm_out, params["w_tag"], params["b_tag"],
                   tags[..., None].astype(jnp.int32),
                   tag_masks[..., None].astype(jnp.float32),
                   params["transitions"], params["start"], params["end"],
                   tc=crf_tc)
    # torchcrf CRF(..., reduction='sum') returns a scalar; `.mean()` of a scalar is identity.
    return llh
    # TODO(synk): CRF Viterbi decode (`predict`) not implemented; only forward() loss path.


if __name__ == "__main__":
    vocab_size, tagset_size, embedding_dim, hidden_dim = 50, 5, 32, 32
    T, B = 8, 2

    key = jax.random.PRNGKey(0)
    k_p, k_s, k_t = jax.random.split(key, 3)
    params = init_params(k_p, vocab_size, tagset_size, embedding_dim, hidden_dim)

    sentences = jax.random.randint(k_s, (T, B), 0, vocab_size, dtype=jnp.int32)
    tags = jax.random.randint(k_t, (T, B), 0, tagset_size, dtype=jnp.int32)
    lengths = jnp.array([T, T - 2], dtype=jnp.int32)
    masks = (jnp.arange(T)[:, None] < lengths[None, :]).astype(jnp.float32)  # (T, B), row 0 ones

    loss = lstm_crf_forward(params, sentences, masks, tags, masks)
    jax.block_until_ready(loss)
    print("KERNEL_OK")
</pallas_src>

<mosaic_0001>
module attributes {stable_mosaic.version = 11 : i64} {
  func.func @_bilstm_kernel(%arg0: i32, %arg1: i32, %arg2: memref<4x2x32xf32, #tpu.memory_space<vmem>>, %arg3: memref<1x32x64xf32, #tpu.memory_space<vmem>>, %arg4: memref<1x16x64xf32, #tpu.memory_space<vmem>>, %arg5: memref<1x1x64xf32, #tpu.memory_space<vmem>>, %arg6: memref<1x4x2x16xf32, #tpu.memory_space<vmem>>, %arg7: memref<4x2x64xf32, #tpu.memory_space<vmem>>, %arg8: memref<2x16xf32, #tpu.memory_space<vmem>>, %arg9: memref<2x16xf32, #tpu.memory_space<vmem>>) attributes {dimension_semantics = [#tpu.dimension_semantics<parallel>, #tpu.dimension_semantics<arbitrary>], iteration_bounds = array<i64: 2, 2>, scalar_prefetch = 0 : i64, scratch_operands = 3 : i64, tpu.core_type = #tpu.core_type<tc>, window_params = [{transform_indices = @transform_0, window_bounds = array<i64: 4, 2, 32>}, {transform_indices = @transform_1, window_bounds = array<i64: 1, 32, 64>}, {transform_indices = @transform_2, window_bounds = array<i64: 1, 16, 64>}, {transform_indices = @transform_3, window_bounds = array<i64: 1, 1, 64>}, {transform_indices = @transform_4, window_bounds = array<i64: 1, 4, 2, 16>}]} {
    %c0_i32 = arith.constant 0 : i32
    %0 = arith.cmpi eq, %arg1, %c0_i32 : i32
    %1 = arith.extui %0 : i1 to i32
    %c0_i32_0 = arith.constant 0 : i32
    %2 = arith.cmpi ne, %1, %c0_i32_0 : i32
    scf.if %2 {
      %cst_92 = arith.constant 0.000000e+00 : f32
      %184 = vector.broadcast %cst_92 : f32 to vector<2x16xf32>
      %c0_93 = arith.constant 0 : index
      %c0_94 = arith.constant 0 : index
      %185 = vector.load %arg8[%c0_93, %c0_94] : memref<2x16xf32, #tpu.memory_space<vmem>>, vector<2x16xf32>
      tpu.vector_store %arg8[%c0_93, %c0_94], %184 {strides = array<i32>} : memref<2x16xf32, #tpu.memory_space<vmem>>, vector<2x16xf32>,
      %cst_95 = arith.constant 0.000000e+00 : f32
      %186 = vector.broadcast %cst_95 : f32 to vector<2x16xf32>
      %c0_96 = arith.constant 0 : index
      %c0_97 = arith.constant 0 : index
      %187 = vector.load %arg9[%c0_96, %c0_97] : memref<2x16xf32, #tpu.memory_space<vmem>>, vector<2x16xf32>
      tpu.vector_store %arg9[%c0_96, %c0_97], %186 {strides = array<i32>} : memref<2x16xf32, #tpu.memory_space<vmem>>, vector<2x16xf32>,
    } else {
    }
    %c0 = arith.constant 0 : index
    %c0_1 = arith.constant 0 : index
    %c0_2 = arith.constant 0 : index
    %3 = vector.load %arg2[%c0, %c0_1, %c0_2] : memref<4x2x32xf32, #tpu.memory_space<vmem>>, vector<4x2x32xf32>
    %4 = vector.shape_cast %3 : vector<4x2x32xf32> to vector<8x32xf32>
    %c0_3 = arith.constant 0 : index
    %c0_4 = arith.constant 0 : index
    %c0_5 = arith.constant 0 : index
    %5 = vector.load %arg3[%c0_3, %c0_4, %c0_5] : memref<1x32x64xf32, #tpu.memory_space<vmem>>, vector<1x32x64xf32>
    %6 = vector.shape_cast %5 : vector<1x32x64xf32> to vector<32x64xf32>
    %cst = arith.constant dense<0.000000e+00> : vector<8x64xf32>
    %7 = tpu.matmul %4, %6, %cst {dimension_numbers = #tpu.dot_dimension_numbers<[1], [0], [0], [1], [0, 0, 1, 1], [], []>} : vector<8x32xf32>, vector<32x64xf32>, vector<8x64xf32> -> vector<8x64xf32>
    %c0_6 = arith.constant 0 : index
    %c0_7 = arith.constant 0 : index
    %c0_8 = arith.constant 0 : index
    %8 = vector.load %arg5[%c0_6, %c0_7, %c0_8] : memref<1x1x64xf32, #tpu.memory_space<vmem>>, vector<1x1x64xf32>
    %9 = vector.shape_cast %8 : vector<1x1x64xf32> to vector<1x64xf32>
    %10 = vector.broadcast %9 : vector<1x64xf32> to vector<8x64xf32>
    %11 = arith.addf %7, %10 : vector<8x64xf32>
    %12 = vector.shape_cast %11 : vector<8x64xf32> to vector<4x2x64xf32>
    %c0_9 = arith.constant 0 : index
    %c0_10 = arith.constant 0 : index
    %c0_11 = arith.constant 0 : index
    %13 = vector.load %arg7[%c0_9, %c0_10, %c0_11] : memref<4x2x64xf32, #tpu.memory_space<vmem>>, vector<4x2x64xf32>
    tpu.vector_store %arg7[%c0_9, %c0_10, %c0_11], %12 {strides = array<i32>} : memref<4x2x64xf32, #tpu.memory_space<vmem>>, vector<4x2x64xf32>,
    %c0_12 = arith.constant 0 : index
    %c0_13 = arith.constant 0 : index
    %c0_14 = arith.constant 0 : index
    %14 = vector.load %arg4[%c0_12, %c0_13, %c0_14] : memref<1x16x64xf32, #tpu.memory_space<vmem>>, vector<1x16x64xf32>
    %15 = vector.shape_cast %14 : vector<1x16x64xf32> to vector<16x64xf32>
    %c0_i32_15 = arith.constant 0 : i32
    %c2_i32 = arith.constant 2 : i32
    %16 = arith.muli %c2_i32, %c0_i32_15 : i32
    %c3_i32 = arith.constant 3 : i32
    %17 = arith.subi %c3_i32, %16 : i32
    %18 = arith.muli %arg0, %17 : i32
    %19 = arith.addi %c0_i32_15, %18 : i32
    %20 = arith.index_cast %19 : i32 to index
    %c0_16 = arith.constant 0 : index
    %c0_17 = arith.constant 0 : index
    %21 = vector.load %arg7[%20, %c0_16, %c0_17] : memref<4x2x64xf32, #tpu.memory_space<vmem>>, vector<1x2x64xf32>
    %22 = vector.shape_cast %21 : vector<1x2x64xf32> to vector<2x64xf32>
    %c0_18 = arith.constant 0 : index
    %c0_19 = arith.constant 0 : index
    %23 = vector.load %arg8[%c0_18, %c0_19] : memref<2x16xf32, #tpu.memory_space<vmem>>, vector<2x16xf32>
    %cst_20 = arith.constant dense<0.000000e+00> : vector<2x64xf32>
    %24 = tpu.matmul %23, %15, %cst_20 {dimension_numbers = #tpu.dot_dimension_numbers<[1], [0], [0], [1], [0, 0, 1, 1], [], []>} : vector<2x16xf32>, vector<16x64xf32>, vector<2x64xf32> -> vector<2x64xf32>
    %25 = arith.addf %22, %24 : vector<2x64xf32>
    %26 = vector.extract_strided_slice %25 {offsets = [0, 0], sizes = [2, 16], strides = [1, 1]} : vector<2x64xf32> to vector<2x16xf32>
    %27 = arith.negf %26 : vector<2x16xf32>
    %28 = math.exp %27 : vector<2x16xf32>
    %cst_21 = arith.constant 1.000000e+00 : f32
    %29 = vector.broadcast %cst_21 : f32 to vector<2x16xf32>
    %30 = arith.addf %29, %28 : vector<2x16xf32>
    %31 = arith.divf %29, %30 : vector<2x16xf32>
    %32 = vector.extract_strided_slice %25 {offsets = [0, 16], sizes = [2, 16], strides = [1, 1]} : vector<2x64xf32> to vector<2x16xf32>
    %33 = arith.negf %32 : vector<2x16xf32>
    %34 = math.exp %33 : vector<2x16xf32>
    %cst_22 = arith.constant 1.000000e+00 : f32
    %35 = vector.broadcast %cst_22 : f32 to vector<2x16xf32>
    %36 = arith.addf %35, %34 : vector<2x16xf32>
    %37 = arith.divf %35, %36 : vector<2x16xf32>
    %38 = vector.extract_strided_slice %25 {offsets = [0, 32], sizes = [2, 16], strides = [1, 1]} : vector<2x64xf32> to vector<2x16xf32>
    %39 = math.tanh %38 : vector<2x16xf32>
    %40 = vector.extract_strided_slice %25 {offsets = [0, 48], sizes = [2, 16], strides = [1, 1]} : vector<2x64xf32> to vector<2x16xf32>
    %41 = arith.negf %40 : vector<2x16xf32>
    %42 = math.exp %41 : vector<2x16xf32>
    %cst_23 = arith.constant 1.000000e+00 : f32
    %43 = vector.broadcast %cst_23 : f32 to vector<2x16xf32>
    %44 = arith.addf %43, %42 : vector<2x16xf32>
    %45 = arith.divf %43, %44 : vector<2x16xf32>
    %c0_24 = arith.constant 0 : index
    %c0_25 = arith.constant 0 : index
    %46 = vector.load %arg9[%c0_24, %c0_25] : memref<2x16xf32, #tpu.memory_space<vmem>>, vector<2x16xf32>
    %47 = arith.mulf %37, %46 : vector<2x16xf32>
    %48 = arith.mulf %31, %39 : vector<2x16xf32>
    %49 = arith.addf %47, %48 : vector<2x16xf32>
    %50 = math.tanh %49 : vector<2x16xf32>
    %51 = arith.mulf %45, %50 : vector<2x16xf32>
    %c0_26 = arith.constant 0 : index
    %c0_27 = arith.constant 0 : index
    %52 = vector.load %arg9[%c0_26, %c0_27] : memref<2x16xf32, #tpu.memory_space<vmem>>, vector<2x16xf32>
    tpu.vector_store %arg9[%c0_26, %c0_27], %49 {strides = array<i32>} : memref<2x16xf32, #tpu.memory_space<vmem>>, vector<2x16xf32>,
    %c0_28 = arith.constant 0 : index
    %c0_29 = arith.constant 0 : index
    %53 = vector.load %arg8[%c0_28, %c0_29] : memref<2x16xf32, #tpu.memory_space<vmem>>, vector<2x16xf32>
    tpu.vector_store %arg8[%c0_28, %c0_29], %51 {strides = array<i32>} : memref<2x16xf32, #tpu.memory_space<vmem>>, vector<2x16xf32>,
    %c0_30 = arith.constant 0 : index
    %54 = arith.index_cast %19 : i32 to index
    %c0_31 = arith.constant 0 : index
    %c0_32 = arith.constant 0 : index
    %55 = vector.load %arg6[%c0_30, %54, %c0_31, %c0_32] : memref<1x4x2x16xf32, #tpu.memory_space<vmem>>, vector<1x1x2x16xf32>
    %56 = vector.shape_cast %55 : vector<1x1x2x16xf32> to vector<2x16xf32>
    %57 = vector.shape_cast %51 : vector<2x16xf32> to vector<1x1x2x16xf32>
    tpu.vector_store %arg6[%c0_30, %54, %c0_31, %c0_32], %57 {strides = array<i32>} : memref<1x4x2x16xf32, #tpu.memory_space<vmem>>, vector<1x1x2x16xf32>,
    %c1_i32 = arith.constant 1 : i32
    %c2_i32_33 = arith.constant 2 : i32
    %58 = arith.muli %c2_i32_33, %c1_i32 : i32
    %c3_i32_34 = arith.constant 3 : i32
    %59 = arith.subi %c3_i32_34, %58 : i32
    %60 = arith.muli %arg0, %59 : i32
    %61 = arith.addi %c1_i32, %60 : i32
    %62 = arith.index_cast %61 : i32 to index
    %c0_35 = arith.constant 0 : index
    %c0_36 = arith.constant 0 : index
    %63 = vector.load %arg7[%62, %c0_35, %c0_36] : memref<4x2x64xf32, #tpu.memory_space<vmem>>, vector<1x2x64xf32>
    %64 = vector.shape_cast %63 : vector<1x2x64xf32> to vector<2x64xf32>
    %c0_37 = arith.constant 0 : index
    %c0_38 = arith.constant 0 : index
    %65 = vector.load %arg8[%c0_37, %c0_38] : memref<2x16xf32, #tpu.memory_space<vmem>>, vector<2x16xf32>
    %cst_39 = arith.constant dense<0.000000e+00> : vector<2x64xf32>
    %66 = tpu.matmul %65, %15, %cst_39 {dimension_numbers = #tpu.dot_dimension_numbers<[1], [0], [0], [1], [0, 0, 1, 1], [], []>} : vector<2x16xf32>, vector<16x64xf32>, vector<2x64xf32> -> vector<2x64xf32>
    %67 = arith.addf %64, %66 : vector<2x64xf32>
    %68 = vector.extract_strided_slice %67 {offsets = [0, 0], sizes = [2, 16], strides = [1, 1]} : vector<2x64xf32> to vector<2x16xf32>
    %69 = arith.negf %68 : vector<2x16xf32>
    %70 = math.exp %69 : vector<2x16xf32>
    %cst_40 = arith.constant 1.000000e+00 : f32
    %71 = vector.broadcast %cst_40 : f32 to vector<2x16xf32>
    %72 = arith.addf %71, %70 : vector<2x16xf32>
    %73 = arith.divf %71, %72 : vector<2x16xf32>
    %74 = vector.extract_strided_slice %67 {offsets = [0, 16], sizes = [2, 16], strides = [1, 1]} : vector<2x64xf32> to vector<2x16xf32>
    %75 = arith.negf %74 : vector<2x16xf32>
    %76 = math.exp %75 : vector<2x16xf32>
    %cst_41 = arith.constant 1.000000e+00 : f32
    %77 = vector.broadcast %cst_41 : f32 to vector<2x16xf32>
    %78 = arith.addf %77, %76 : vector<2x16xf32>
    %79 = arith.divf %77, %78 : vector<2x16xf32>
    %80 = vector.extract_strided_slice %67 {offsets = [0, 32], sizes = [2, 16], strides = [1, 1]} : vector<2x64xf32> to vector<2x16xf32>
    %81 = math.tanh %80 : vector<2x16xf32>
    %82 = vector.extract_strided_slice %67 {offsets = [0, 48], sizes = [2, 16], strides = [1, 1]} : vector<2x64xf32> to vector<2x16xf32>
    %83 = arith.negf %82 : vector<2x16xf32>
    %84 = math.exp %83 : vector<2x16xf32>
    %cst_42 = arith.constant 1.000000e+00 : f32
    %85 = vector.broadcast %cst_42 : f32 to vector<2x16xf32>
    %86 = arith.addf %85, %84 : vector<2x16xf32>
    %87 = arith.divf %85, %86 : vector<2x16xf32>
    %c0_43 = arith.constant 0 : index
    %c0_44 = arith.constant 0 : index
    %88 = vector.load %arg9[%c0_43, %c0_44] : memref<2x16xf32, #tpu.memory_space<vmem>>, vector<2x16xf32>
    %89 = arith.mulf %79, %88 : vector<2x16xf32>
    %90 = arith.mulf %73, %81 : vector<2x16xf32>
    %91 = arith.addf %89, %90 : vector<2x16xf32>
    %92 = math.tanh %91 : vector<2x16xf32>
    %93 = arith.mulf %87, %92 : vector<2x16xf32>
    %c0_45 = arith.constant 0 : index
    %c0_46 = arith.constant 0 : index
    %94 = vector.load %arg9[%c0_45, %c0_46] : memref<2x16xf32, #tpu.memory_space<vmem>>, vector<2x16xf32>
    tpu.vector_store %arg9[%c0_45, %c0_46], %91 {strides = array<i32>} : memref<2x16xf32, #tpu.memory_space<vmem>>, vector<2x16xf32>,
    %c0_47 = arith.constant 0 : index
    %c0_48 = arith.constant 0 : index
    %95 = vector.load %arg8[%c0_47, %c0_48] : memref<2x16xf32, #tpu.memory_space<vmem>>, vector<2x16xf32>
    tpu.vector_store %arg8[%c0_47, %c0_48], %93 {strides = array<i32>} : memref<2x16xf32, #tpu.memory_space<vmem>>, vector<2x16xf32>,
    %c0_49 = arith.constant 0 : index
    %96 = arith.index_cast %61 : i32 to index
    %c0_50 = arith.constant 0 : index
    %c0_51 = arith.constant 0 : index
    %97 = vector.load %arg6[%c0_49, %96, %c0_50, %c0_51] : memref<1x4x2x16xf32, #tpu.memory_space<vmem>>, vector<1x1x2x16xf32>
    %98 = vector.shape_cast %97 : vector<1x1x2x16xf32> to vector<2x16xf32>
    %99 = vector.shape_cast %93 : vector<2x16xf32> to vector<1x1x2x16xf32>
    tpu.vector_store %arg6[%c0_49, %96, %c0_50, %c0_51], %99 {strides = array<i32>} : memref<1x4x2x16xf32, #tpu.memory_space<vmem>>, vector<1x1x2x16xf32>,
    %c2_i32_52 = arith.constant 2 : i32
    %c2_i32_53 = arith.constant 2 : i32
    %100 = arith.muli %c2_i32_53, %c2_i32_52 : i32
    %c3_i32_54 = arith.constant 3 : i32
    %101 = arith.subi %c3_i32_54, %100 : i32
    %102 = arith.muli %arg0, %101 : i32
    %103 = arith.addi %c2_i32_52, %102 : i32
    %104 = arith.index_cast %103 : i32 to index
    %c0_55 = arith.constant 0 : index
    %c0_56 = arith.constant 0 : index
    %105 = vector.load %arg7[%104, %c0_55, %c0_56] : memref<4x2x64xf32, #tpu.memory_space<vmem>>, vector<1x2x64xf32>
    %106 = vector.shape_cast %105 : vector<1x2x64xf32> to vector<2x64xf32>
    %c0_57 = arith.constant 0 : index
    %c0_58 = arith.constant 0 : index
    %107 = vector.load %arg8[%c0_57, %c0_58] : memref<2x16xf32, #tpu.memory_space<vmem>>, vector<2x16xf32>
    %cst_59 = arith.constant dense<0.000000e+00> : vector<2x64xf32>
    %108 = tpu.matmul %107, %15, %cst_59 {dimension_numbers = #tpu.dot_dimension_numbers<[1], [0], [0], [1], [0, 0, 1, 1], [], []>} : vector<2x16xf32>, vector<16x64xf32>, vector<2x64xf32> -> vector<2x64xf32>
    %109 = arith.addf %106, %108 : vector<2x64xf32>
    %110 = vector.extract_strided_slice %109 {offsets = [0, 0], sizes = [2, 16], strides = [1, 1]} : vector<2x64xf32> to vector<2x16xf32>
    %111 = arith.negf %110 : vector<2x16xf32>
    %112 = math.exp %111 : vector<2x16xf32>
    %cst_60 = arith.constant 1.000000e+00 : f32
    %113 = vector.broadcast %cst_60 : f32 to vector<2x16xf32>
    %114 = arith.addf %113, %112 : vector<2x16xf32>
    %115 = arith.divf %113, %114 : vector<2x16xf32>
    %116 = vector.extract_strided_slice %109 {offsets = [0, 16], sizes = [2, 16], strides = [1, 1]} : vector<2x64xf32> to vector<2x16xf32>
    %117 = arith.negf %116 : vector<2x16xf32>
    %118 = math.exp %117 : vector<2x16xf32>
    %cst_61 = arith.constant 1.000000e+00 : f32
    %119 = vector.broadcast %cst_61 : f32 to vector<2x16xf32>
    %120 = arith.addf %119, %118 : vector<2x16xf32>
    %121 = arith.divf %119, %120 : vector<2x16xf32>
    %122 = vector.extract_strided_slice %109 {offsets = [0, 32], sizes = [2, 16], strides = [1, 1]} : vector<2x64xf32> to vector<2x16xf32>
    %123 = math.tanh %122 : vector<2x16xf32>
    %124 = vector.extract_strided_slice %109 {offsets = [0, 48], sizes = [2, 16], strides = [1, 1]} : vector<2x64xf32> to vector<2x16xf32>
    %125 = arith.negf %124 : vector<2x16xf32>
    %126 = math.exp %125 : vector<2x16xf32>
    %cst_62 = arith.constant 1.000000e+00 : f32
    %127 = vector.broadcast %cst_62 : f32 to vector<2x16xf32>
    %128 = arith.addf %127, %126 : vector<2x16xf32>
    %129 = arith.divf %127, %128 : vector<2x16xf32>
    %c0_63 = arith.constant 0 : index
    %c0_64 = arith.constant 0 : index
    %130 = vector.load %arg9[%c0_63, %c0_64] : memref<2x16xf32, #tpu.memory_space<vmem>>, vector<2x16xf32>
    %131 = arith.mulf %121, %130 : vector<2x16xf32>
    %132 = arith.mulf %115, %123 : vector<2x16xf32>
    %133 = arith.addf %131, %132 : vector<2x16xf32>
    %134 = math.tanh %133 : vector<2x16xf32>
    %135 = arith.mulf %129, %134 : vector<2x16xf32>
    %c0_65 = arith.constant 0 : index
    %c0_66 = arith.constant 0 : index
    %136 = vector.load %arg9[%c0_65, %c0_66] : memref<2x16xf32, #tpu.memory_space<vmem>>, vector<2x16xf32>
    tpu.vector_store %arg9[%c0_65, %c0_66], %133 {strides = array<i32>} : memref<2x16xf32, #tpu.memory_space<vmem>>, vector<2x16xf32>,
    %c0_67 = arith.constant 0 : index
    %c0_68 = arith.constant 0 : index
    %137 = vector.load %arg8[%c0_67, %c0_68] : memref<2x16xf32, #tpu.memory_space<vmem>>, vector<2x16xf32>
    tpu.vector_store %arg8[%c0_67, %c0_68], %135 {strides = array<i32>} : memref<2x16xf32, #tpu.memory_space<vmem>>, vector<2x16xf32>,
    %c0_69 = arith.constant 0 : index
    %138 = arith.index_cast %103 : i32 to index
    %c0_70 = arith.constant 0 : index
    %c0_71 = arith.constant 0 : index
    %139 = vector.load %arg6[%c0_69, %138, %c0_70, %c0_71] : memref<1x4x2x16xf32, #tpu.memory_space<vmem>>, vector<1x1x2x16xf32>
    %140 = vector.shape_cast %139 : vector<1x1x2x16xf32> to vector<2x16xf32>
    %141 = vector.shape_cast %135 : vector<2x16xf32> to vector<1x1x2x16xf32>
    tpu.vector_store %arg6[%c0_69, %138, %c0_70, %c0_71], %141 {strides = array<i32>} : memref<1x4x2x16xf32, #tpu.memory_space<vmem>>, vector<1x1x2x16xf32>,
    %c3_i32_72 = arith.constant 3 : i32
    %c2_i32_73 = arith.constant 2 : i32
    %142 = arith.muli %c2_i32_73, %c3_i32_72 : i32
    %c3_i32_74 = arith.constant 3 : i32
    %143 = arith.subi %c3_i32_74, %142 : i32
    %144 = arith.muli %arg0, %143 : i32
    %145 = arith.addi %c3_i32_72, %144 : i32
    %146 = arith.index_cast %145 : i32 to index
    %c0_75 = arith.constant 0 : index
    %c0_76 = arith.constant 0 : index
    %147 = vector.load %arg7[%146, %c0_75, %c0_76] : memref<4x2x64xf32, #tpu.memory_space<vmem>>, vector<1x2x64xf32>
    %148 = vector.shape_cast %147 : vector<1x2x64xf32> to vector<2x64xf32>
    %c0_77 = arith.constant 0 : index
    %c0_78 = arith.constant 0 : index
    %149 = vector.load %arg8[%c0_77, %c0_78] : memref<2x16xf32, #tpu.memory_space<vmem>>, vector<2x16xf32>
    %cst_79 = arith.constant dense<0.000000e+00> : vector<2x64xf32>
    %150 = tpu.matmul %149, %15, %cst_79 {dimension_numbers = #tpu.dot_dimension_numbers<[1], [0], [0], [1], [0, 0, 1, 1], [], []>} : vector<2x16xf32>, vector<16x64xf32>, vector<2x64xf32> -> vector<2x64xf32>
    %151 = arith.addf %148, %150 : vector<2x64xf32>
    %152 = vector.extract_strided_slice %151 {offsets = [0, 0], sizes = [2, 16], strides = [1, 1]} : vector<2x64xf32> to vector<2x16xf32>
    %153 = arith.negf %152 : vector<2x16xf32>
    %154 = math.exp %153 : vector<2x16xf32>
    %cst_80 = arith.constant 1.000000e+00 : f32
    %155 = vector.broadcast %cst_80 : f32 to vector<2x16xf32>
    %156 = arith.addf %155, %154 : vector<2x16xf32>
    %157 = arith.divf %155, %156 : vector<2x16xf32>
    %158 = vector.extract_strided_slice %151 {offsets = [0, 16], sizes = [2, 16], strides = [1, 1]} : vector<2x64xf32> to vector<2x16xf32>
    %159 = arith.negf %158 : vector<2x16xf32>
    %160 = math.exp %159 : vector<2x16xf32>
    %cst_81 = arith.constant 1.000000e+00 : f32
    %161 = vector.broadcast %cst_81 : f32 to vector<2x16xf32>
    %162 = arith.addf %161, %160 : vector<2x16xf32>
    %163 = arith.divf %161, %162 : vector<2x16xf32>
    %164 = vector.extract_strided_slice %151 {offsets = [0, 32], sizes = [2, 16], strides = [1, 1]} : vector<2x64xf32> to vector<2x16xf32>
    %165 = math.tanh %164 : vector<2x16xf32>
    %166 = vector.extract_strided_slice %151 {offsets = [0, 48], sizes = [2, 16], strides = [1, 1]} : vector<2x64xf32> to vector<2x16xf32>
    %167 = arith.negf %166 : vector<2x16xf32>
    %168 = math.exp %167 : vector<2x16xf32>
    %cst_82 = arith.constant 1.000000e+00 : f32
    %169 = vector.broadcast %cst_82 : f32 to vector<2x16xf32>
    %170 = arith.addf %169, %168 : vector<2x16xf32>
    %171 = arith.divf %169, %170 : vector<2x16xf32>
    %c0_83 = arith.constant 0 : index
    %c0_84 = arith.constant 0 : index
    %172 = vector.load %arg9[%c0_83, %c0_84] : memref<2x16xf32, #tpu.memory_space<vmem>>, vector<2x16xf32>
    %173 = arith.mulf %163, %172 : vector<2x16xf32>
    %174 = arith.mulf %157, %165 : vector<2x16xf32>
    %175 = arith.addf %173, %174 : vector<2x16xf32>
    %176 = math.tanh %175 : vector<2x16xf32>
    %177 = arith.mulf %171, %176 : vector<2x16xf32>
    %c0_85 = arith.constant 0 : index
    %c0_86 = arith.constant 0 : index
    %178 = vector.load %arg9[%c0_85, %c0_86] : memref<2x16xf32, #tpu.memory_space<vmem>>, vector<2x16xf32>
    tpu.vector_store %arg9[%c0_85, %c0_86], %175 {strides = array<i32>} : memref<2x16xf32, #tpu.memory_space<vmem>>, vector<2x16xf32>,
    %c0_87 = arith.constant 0 : index
    %c0_88 = arith.constant 0 : index
    %179 = vector.load %arg8[%c0_87, %c0_88] : memref<2x16xf32, #tpu.memory_space<vmem>>, vector<2x16xf32>
    tpu.vector_store %arg8[%c0_87, %c0_88], %177 {strides = array<i32>} : memref<2x16xf32, #tpu.memory_space<vmem>>, vector<2x16xf32>,
    %c0_89 = arith.constant 0 : index
    %180 = arith.index_cast %145 : i32 to index
    %c0_90 = arith.constant 0 : index
    %c0_91 = arith.constant 0 : index
    %181 = vector.load %arg6[%c0_89, %180, %c0_90, %c0_91] : memref<1x4x2x16xf32, #tpu.memory_space<vmem>>, vector<1x1x2x16xf32>
    %182 = vector.shape_cast %181 : vector<1x1x2x16xf32> to vector<2x16xf32>
    %183 = vector.shape_cast %177 : vector<2x16xf32> to vector<1x1x2x16xf32>
    tpu.vector_store %arg6[%c0_89, %180, %c0_90, %c0_91], %183 {strides = array<i32>} : memref<1x4x2x16xf32, #tpu.memory_space<vmem>>, vector<1x1x2x16xf32>,
    %c4_i32 = arith.constant 4 : i32
    return
  }
  func.func @transform_0(%arg0: i32, %arg1: i32) -> (i32, i32, i32) {
    %c2_i32 = arith.constant 2 : i32
    %0 = arith.muli %c2_i32, %arg1 : i32
    %c1_i32 = arith.constant 1 : i32
    %1 = arith.subi %c1_i32, %0 : i32
    %2 = arith.muli %arg0, %1 : i32
    %3 = arith.addi %arg1, %2 : i32
    %c0_i32 = arith.constant 0 : i32
    %c0_i32_0 = arith.constant 0 : i32
    %c0_i32_1 = arith.constant 0 : i32
    return %3, %c0_i32, %c0_i32_0 : i32, i32, i32
  }
  func.func @transform_1(%arg0: i32, %arg1: i32) -> (i32, i32, i32) {
    %c0_i32 = arith.constant 0 : i32
    %c0_i32_0 = arith.constant 0 : i32
    %c0_i32_1 = arith.constant 0 : i32
    return %arg0, %c0_i32, %c0_i32_0 : i32, i32, i32
  }
  func.func @transform_2(%arg0: i32, %arg1: i32) -> (i32, i32, i32) {
    %c0_i32 = arith.constant 0 : i32
    %c0_i32_0 = arith.constant 0 : i32
    %c0_i32_1 = arith.constant 0 : i32
    return %arg0, %c0_i32, %c0_i32_0 : i32, i32, i32
  }
  func.func @transform_3(%arg0: i32, %arg1: i32) -> (i32, i32, i32) {
    %c0_i32 = arith.constant 0 : i32
    %c0_i32_0 = arith.constant 0 : i32
    %c0_i32_1 = arith.constant 0 : i32
    return %arg0, %c0_i32, %c0_i32_0 : i32, i32, i32
  }
  func.func @transform_4(%arg0: i32, %arg1: i32) -> (i32, i32, i32, i32) {
    %c2_i32 = arith.constant 2 : i32
    %0 = arith.muli %c2_i32, %arg1 : i32
    %c1_i32 = arith.constant 1 : i32
    %1 = arith.subi %c1_i32, %0 : i32
    %2 = arith.muli %arg0, %1 : i32
    %3 = arith.addi %arg1, %2 : i32
    %c0_i32 = arith.constant 0 : i32
    %c0_i32_0 = arith.constant 0 : i32
    %c0_i32_1 = arith.constant 0 : i32
    return %arg0, %3, %c0_i32, %c0_i32_0 : i32, i32, i32, i32
  }
}

</mosaic_0001>

<bundles_post_ra>
// kernel: tpu_custom_call.1
= control target key start
LH: loop header
LB: loop body
LE: loop exit
PB: predicated region body
PF: predicated region fallthrough
CT: control target
= control target key end

     0   :  { %s1839_s0 = inlined_call_operand.hbm [shape: f32[8,2,32], index: 0, kind: input, shape index: {}]   ;;  %s1840_s1 = inlined_call_operand.hbm [shape: f32[2,32,64], index: 1, kind: input, shape index: {}]   ;;  %s1841_s2 = inlined_call_operand.hbm [shape: f32[2,16,64], index: 2, kind: input, shape index: {}]   ;;  %s1842_s3 = inlined_call_operand.vmem [shape: f32[2,1,64], index: 3, kind: input, shape index: {}]   ;;  %s1843_s4 = inlined_call_operand.hbm [shape: f32[2,8,2,16], index: 4, kind: output, shape index: {}]  }
   0x1   :  { %1860 = sst [smem:[#allocation28_spill]] %s1840_s1 }
   0x2   :  { %1861 = sst [smem:[#allocation29_spill]] %s1842_s3 }
   0x3   :  { %1862 = sst [smem:[#allocation30_spill]] %s1843_s4 }
   0x4   :  { %9 = vsyncpa [#allocation6], 0 }
   0x5   :  { %11 = vsyncpa [#allocation6 + $0x1], 0 }
   0x6   :  { %12 = vsyncpa [#allocation9], 0 }
   0x7   :  { %14 = vsyncpa [#allocation9 + $0x1], 0 }
   0x8   :  { %15 = vsyncpa [#allocation7], 0 }
   0x9   :  { %17 = vsyncpa [#allocation7 + $0x1], 0  ;;  %s1456_s15 = smov 0   ;;  %s1458_s16 = smov 0  }
   0xa   :  { %s1460_s17 = smov 0   ;;  %s1462_s18 = smov 0  }
   0xb   :  { %s1464_s19 = smov 0   ;;  %s1466_s20 = smov 0  }
   0xc   :  { %s1468_s21 = smov 0   ;;  %s1470_s22 = smov 0  }
   0xd   :  { %s1472_s23 = smov 0   ;;  %s1474_s24 = smov 0  }
   0xe   :  { %s1476_s25 = smov 0   ;;  %s1478_s26 = smov 0  }
   0xf   :  { %s1480_s27 = smov 0   ;;  %s1482_s28 = smov 0  }
  0x10 LB: > { %1863 = sst [smem:[#allocation15_spill]] %s1374_s17  ;;  %s1525_s29 = sadd.s32 4294967295, %s1418_s28   ;;  %s1418_s28 = sphi %s1482_s28, %s23_s28   ;;  %s1414_s27 = sphi %s1480_s27, %s1918_s27   ;;  %s1410_s26 = sphi %s1478_s26, %s1917_s26   ;;  %s1406_s25 = sphi %s1476_s25, %s1916_s25   ;;  %s1402_s24 = sphi %s1474_s24, %s1908_s24   ;;  %s1398_s23 = sphi %s1472_s23, %s1907_s23   ;;  %s1394_s22 = sphi %s1470_s22, %s1915_s22   ;;  %s1390_s21 = sphi %s1468_s21, %s1914_s21   ;;  %s1386_s20 = sphi %s1466_s20, %s1905_s20   ;;  %s1382_s19 = sphi %s1464_s19, %s1904_s19   ;;  %s1378_s18 = sphi %s1462_s18, %s1903_s18   ;;  %s1374_s17 = sphi %s1460_s17, %s1902_s17   ;;  %s1370_s16 = sphi %s1458_s16, %s1913_s16   ;;  %s1366_s15 = sphi %s1456_s15, %s1912_s15  }
  0x11   : > { %1864 = sst [smem:[#allocation16_spill]] %s1382_s19  ;;  %p58_p0 = scmp.eq.s32.totalorder %s1418_s28, 0 }
  0x12   : > { %1865 = sst [smem:[#allocation17_spill]] %s1386_s20  ;;  %p64_p1 = scmp.eq.s32.totalorder %s1525_s29, 0 }
  0x13   : > { %1866 = sst [smem:[#allocation18_spill]] %s1398_s23  ;;  %p83_p2 = scmp.ne.s32.totalorder %s1386_s20, %s1382_s19 }
  0x14   : > { %1867 = sst [smem:[#allocation19_spill]] %s1402_s24  ;;  %p89_p3 = scmp.ne.s32.totalorder %s1382_s19, %s1378_s18 }
  0x15   : > { %1868 = sst [smem:[#allocation20_spill]] %s1406_s25  ;;  %p1855_p4 = scmp.lt.s32.totalorder %s1418_s28, 4 }
  0x16   : > { %1869 = sst [smem:[#allocation21_spill]] %s1410_s26  ;;  %p85_p5 = por %p83_p2, %p58_p0 }
  0x17   : > { %p1538_p6 = por %p89_p3, %p64_p1  ;;  %s227_s6 = sand.u32 1, %s1418_s28  }
  0x18   : > { %s229_s7 = sand.u32 1, %s1386_s20   ;;  %s996_s9 = sshll.u32 %s1414_s27, 5 }
  0x19   : > { %s1870_s5 = scalar_select %p1538_p6, 1, 0 }
  0x1a   : > { %s957_s8 = sshll.u32 %s229_s7, 5  ;;  %s1872_s1 = sld [smem:[#allocation28_spill]] }
  0x1b   : > { %1871 = sst [smem:[#allocation22_spill]] %s1870_s5  ;;  %s231_s13 = scalar_lea.vmem [#allocation8], %s957_s8 }
  0x1c   : > { %s239_s14 = sshll.u32 %s231_s13, 4  ;;  %p1550_p7 = pnand %p1855_p4, %p85_p5  ;;  %s240_s14 = int_to_ptr.vmem [resolvable:$true] %s239_s14 }
  0x1d   : > { %s960_s4 = sshll.u32 %s229_s7, 4  ;;  %s1554_s10 = scalar_lea.sflag [#allocation9], %s227_s6 }
  0x1e   : > { %s1845_s8 = smov 128   ;;  %p963_p8 = scmp.ge.s32.totalorder %s1418_s28, 1 }
  0x1f   : > { %s253_s11 = scalar_lea.vmem [#allocation10], %s960_s4  ;;  %p275_p9 = scmp.lt.s32.totalorder %s1418_s28, 5 }
  0x20   : > { %s236_s12 = scalar_lea.hbm %s1872_s1, %s996_s9  ;;  %s1846_s9 = smov 8  }
  0x21   : > { %s237_s18 = sshll.u32 %s236_s12, 4  ;;  %s1563_s12 = sshll.u32 %s253_s11, 4  ;;  %s238_s18 = int_to_ptr.hbm [resolvable:$true] %s237_s18  ;;  %s262_s12 = int_to_ptr.vmem [resolvable:$true] %s1563_s12 }
  0x22   : > { %1012 = dma.hbm_to_vmem [thread:$0]  (!%p1550_p7), %s238_s18, 512, %s240_s14, %s1554_s10, %s1845_s8, %s1845_s8, %s1846_s9  }
  0x23   : > { %p1566_p10 = pnand %p963_p8, %p275_p9  ;;  %s32_s13 = sadd.s32 1, %s1410_s26 }
  0x24   : > { %s35_s1 = sadd.s32 1, %s1414_s27  ;;  %p33_p11 = scmp.ge.s32.totalorder %s32_s13, 2 }
  0x25   : > { %s947_s14 = sshll.u32 %s1410_s26, 1  ;;  %s50_s18 = sadd.s32 1, %s1398_s23 }
  0x26   : > { %s40_s4 = ssub.s32 1, %s947_s14  ;;  %s1920_s13 = smov (%p33_p11, %s32_s13), 0 }
  0x27   : > { %1875 = sst [smem:[#allocation23_spill]] %s1920_s13  ;;  %s1922_s1 = smov (!%p33_p11, %s35_s1), %s1414_s27 }
  0x28   : > { %s41_s11 = smul.u32 %s1414_s27, %s40_s4  ;;  %s948_s8 = sshll.u32 %s1920_s13, 1 }
  0x29   : > { %p37_p12 = scmp.ge.s32.totalorder %s1922_s1, 2  ;;  %s44_s9 = ssub.s32 1, %s948_s8 }
  0x2a   : > { %s42_s7 = sadd.s32 %s1410_s26, %s41_s11  ;;  %p57_p13 = scmp.ne.s32.totalorder %s1398_s23, %s1394_s22 }
  0x2b   : > { %s1924_s1 = smov (%p37_p12, %s1922_s1), 0  ;;  %p63_p3 = scmp.ne.s32.totalorder %s1394_s22, %s1390_s21 }
  0x2c   : > { %1876 = sst [smem:[#allocation24_spill]] %s1924_s1  ;;  %p1587_p2 = por %p58_p0, %p57_p13 }
  0x2d   : > { %s45_s8 = smul.u32 %s44_s9, %s1924_s1  ;;  %s73_s4 = ssub.s32 %s1414_s27, %s1924_s1 }
  0x2e   : > { %p1598_p5 = por %p64_p1, %p63_p3  ;;  %p74_p8 = scmp.eq.s32.totalorder %s73_s4, 0 }
  0x2f   : > { %s46_s26 = sadd.s32 %s45_s8, %s1920_s13  ;;  %s164_s24 = sadd.s32 1, %s1374_s17 }
  0x30   : > { %s47_s3 = ssub.s32 %s42_s7, %s46_s26  ;;  %p174_p0 = scmp.ne.s32.totalorder %s1374_s17, %s1370_s16 }
  0x31   : > { %p48_p9 = scmp.eq.s32.totalorder %s47_s3, 0  ;;  %s161_s25 = sor.u32 %s73_s4, %s47_s3 }
  0x32   : > { %s1879_s5 = sadd.s32 1, %s1386_s20  ;;  %p162_p11 = scmp.eq.s32.totalorder %s161_s25, 0 }
  0x33   : > { %s1609_s19 = scalar_select %p74_p8, %s1386_s20, %s1879_s5  }
  0x34   : > { %s1612_s21 = scalar_select %p48_p9, %s1398_s23, %s50_s18  }
  0x35   : > { %1880 = sst [smem:[#allocation25_spill]] %s1609_s19  ;;  %p175_p1 = scmp.eq.s32.totalorder %s1525_s29, 3 }
  0x36   : > { %1881 = sst [smem:[#allocation26_spill]] %s1612_s21  ;;  %p180_p12 = scmp.ne.s32.totalorder %s1370_s16, %s1366_s15 }
  0x37   : > { %s1882_s9 = sadd.s32 4294967294, %s1418_s28   ;;  %p1622_p3 = por %p175_p1, %p174_p0 }
  0x38   : > { %p181_p13 = scmp.eq.s32.totalorder %s1882_s9, 3  ;;  %s201_s5 = sand.u32 1, %s1398_s23  }
  0x39   : > { %s1620_s1 = scalar_select %p162_p11, %s1374_s17, %s164_s24  }
  0x3a   : > { %p1626_p4 = por %p181_p13, %p180_p12  ;;  %s995_s18 = sshll.u32 %s42_s7, 3 }
  0x3b   : > { %1883 = sst [smem:[#allocation27_spill]] %s1620_s1  ;;  %s953_s25 = sshll.u32 %s201_s5, 3 }
  0x3c   : > { %s1885_s3 = scalar_select %p1626_p4, 1, 0 }
  0x3d   : > { %s214_s13 = scalar_lea.hbm %s1839_s0, %s995_s18  ;;  %s205_s19 = scalar_lea.vmem [#allocation5], %s953_s25 }
  0x3e   : > { %s215_s21 = sshll.u32 %s214_s13, 4  ;;  %s217_s9 = sshll.u32 %s205_s19, 4  ;;  %s216_s21 = int_to_ptr.hbm [resolvable:$true] %s215_s21  ;;  %s218_s9 = int_to_ptr.vmem [resolvable:$true] %s217_s9 }
  0x3f   : > { %p1886_p8 = scmp.lt.s32.totalorder %s1418_s28, 4  ;;  %s997_s20 = sshll.u32 %s1414_s27, 4 }
  0x40   : > { %s258_s1 = scalar_lea.hbm %s1841_s2, %s997_s20  ;;  %s202_s17 = scalar_lea.sflag [#allocation6], %s201_s5 }
  0x41   : > { %p1638_p0 = pnand %p1886_p8, %p1587_p2  ;;  %s1208_s8 = sshra.s32 %s216_s21, 4  ;;  %s1209_s8 = int_to_ptr.hbm [resolvable:$true] %s1208_s8 }
  0x42   : > { %s1210_s13 = scalar_lea.hbm %s1209_s8, 8  ;;  %s1215_s18 = scalar_lea.hbm %s1839_s0, 16 }
  0x43   : > { %p1211_p9 = scmp.ne.s32.totalorder %s1209_s8, %s1210_s13  ;;  %p1212_p11 = pneg %p1638_p0 }
  0x44   : > { %p1216_p2 = scmp.lt.s32.totalorder %s1209_s8, %s1839_s0  ;;  %p1217_p13 = scmp.lt.s32.totalorder %s1215_s18, %s1210_s13 }
  0x45   : > { %p1213_p1 = pnand %p1212_p11, %p1211_p9 }
  0x46   : > { %p1218_p8 = por %p1217_p13, %p1216_p2 }
  0x47   : > { %p1214_p12 = pneg %p1213_p1 }
  0x49   : > { %p1219_p4 = pnand %p1218_p8, %p1214_p12 }
  0x4b   : > { %1222 = shalt.err (!%p1219_p4)
}
  0x4c   : > { %s1422_s20 = smov 32   ;;  %s1423_s23 = smov 2  }
  0x4d   : > { %1009 = dma.hbm_to_vmem [thread:$0]  (!%p1638_p0), %s216_s21, 128, %s218_s9, %s202_s17, %s1422_s20, %s1422_s20, %s1423_s23  }
  0x4e   : > { %s259_s5 = sshll.u32 %s258_s1, 4  ;;  %s1888_s7 = smov 8   ;;  %s260_s5 = int_to_ptr.hbm [resolvable:$true] %s259_s5 }
  0x4f   : > { %s1889_s19 = smov 128   ;;  %279 = sbr.rel (%p1566_p10) target bundleno = 2518 (0x9d6), region = 36 }
  0x50   : > { %1015 = dma.hbm_to_vmem [thread:$0]  (!%p1550_p7), %s260_s5, 256, %s262_s12, %s1554_s10, %s1889_s19, %s1889_s19, %s1888_s7  }
  0x51   : > { %s281_s8 = sand.u32 (!%p1566_p10), 1, %s1394_s22  }
  0x52   : > { %s964_s13 = sshll.u32 (!%p1566_p10), %s281_s8, 3  ;;  %s282_s14 = scalar_lea.sflag (!%p1566_p10), [#allocation6], %s281_s8 }
  0x53   : > { %s1666_s18 = scalar_lea.vmem (!%p1566_p10), [#allocation5], %s964_s13 }
  0x54   : > { %1353 = dma.done.wait (%p1598_p5), %s282_s14, 128  }
  0x55   : > { %1355 = vsyncadd (%p1598_p5), %s282_s14, 4294967168  ;;  %s1890_s1 = sld [smem:[#allocation16_spill]]  ;;  %s291_s30 = sand.u32 1, %s1525_s29  }
  0x56   : > { %s292_s6 = scalar_lea.sflag [#allocation9], %s291_s30 }
  0x5b   : > { %s293_s10 = sand.u32 1, %s1890_s1  }
  0x5c   : > { %s965_s12 = sshll.u32 %s293_s10, 5 }
  0x5d   : > { %s295_s21 = scalar_lea.vmem [#allocation8], %s965_s12 }
  0x5e   : > { %1357 = dma.done.wait (%p1538_p6), %s292_s6, 768  }
  0x5f   : > { %1359 = vsyncadd (%p1538_p6), %s292_s6, 4294966528  ;;  %s1892_s9 = sld [smem:[#allocation20_spill]]  ;;  %s966_s24 = sshll.u32 %s293_s10, 4 }
  0x60   : > { %s341_s11 = sand.u32 1, %s1370_s16   ;;  %s1893_s20 = sld [smem:[#allocation29_spill]] }
  0x61   : > { %s967_s25 = sshll.u32 %s341_s11, 3  ;;  %s305_s5 = scalar_lea.vmem [#allocation10], %s966_s24 }
  0x62   : > { %s1689_s7 = scalar_lea.vmem [#allocation11], %s967_s25  ;;  %s1894_s19 = sld [smem:[#allocation19_spill]] }
  0x65   : > { %p349_p4 = scmp.lt.s32.totalorder %s1892_s9, 1 }
  0x67   : > { %s1926_s9 = smov (!%p349_p4, %s1892_s9), 1 }
  0x68   : > { %s351_s23 = scalar_lea.vmem %s1893_s20, %s1926_s9  ;;  %p968_p6 = scmp.ne.s32.totalorder %s1894_s19, 0 }
  0x6a   : > { %360 = sbr.rel (%p968_p6) target bundleno = 114 (0x72), region = 52 }
  0x6f   : > { %vm361_vm0 = vcmask 123904   ;;  %v1424_v0 = vmov 0.0  }
  0x70   : > { %362 = vst.msk [vmem:[#allocation3] sm:$0x3] %vm361_vm0, %v1424_v0 }
  0x71   : > { %363 = vst.msk [vmem:[#allocation4] sm:$0x3] %vm361_vm0, %v1424_v0 }
  0x72 PF: > { %v371_v1 = vld [vmem:[%s295_s21 + $0x18] sm:$0xff]  ;;  %v370_v2 = vld [vmem:[%s295_s21 + $0x10] sm:$0xff]  ;;  %v369_v3 = vld [vmem:[%s295_s21 + $0x8] sm:$0xff]  ;;  %vm430_vm1 = vcmask 130048   ;;  %s1895_s8 = sld [smem:[#allocation20_spill]]  ;;  %vm388_vm2 = vcmask 261120  }
  0x73   : > { %403 = vmatpush.msra.mxu0 %v371_v1  ;;  %v364_v4 = vld [vmem:[%s1666_s18] sm:$0x3]  ;;  %v365_v5 = vld [vmem:[%s1666_s18 + $0x2] sm:$0x3]  ;;  %v366_v6 = vld [vmem:[%s1666_s18 + $0x4] sm:$0x3] }
  0x74   : > { %v367_v7 = vld [vmem:[%s1666_s18 + $0x6] sm:$0x3]  ;;  %380 = vst [vmem:[#allocation1] ss:$4 sm:$0xff] %v364_v4  ;;  %v368_v8 = vld [vmem:[%s295_s21] sm:$0xff]  ;;  %vm418_vm3 = vcmask 517120  }
  0x75   : > { %404 = vmatpush.msra.mxu0 %v370_v2  ;;  %382 = vst [vmem:[#allocation1 + $0x1] ss:$4 sm:$0xff] %v365_v5  ;;  %v424_v9 = vld [vmem:[%s305_s5 + $0x8] sm:$0xff]  ;;  %v423_v10 = vld [vmem:[%s305_s5] sm:$0xff]  ;;  %s1425_s30 = smov 96   ;;  %s1426_s10 = smov 16  }
  0x76   : > { %384 = vst [vmem:[#allocation1 + $0x2] ss:$4 sm:$0xff] %v366_v6  ;;  %448 = vmatpush.msra.mxu1 %v424_v9  ;;  %532 = vmatpush.msra.mxu2 %v424_v9  ;;  %v1145_v13 = vld [vmem:[%s351_s23] ss:$0 sm:$0xff]  ;;  %s1427_s12 = smov 32   ;;  %s1428_s6 = smov 80  }
  0x77   : > { %v429_v11 = vld [vmem:[#allocation3] sm:$0x3]  ;;  %405 = vmatpush.msra.mxu0 %v369_v3  ;;  %386 = vst [vmem:[#allocation1 + $0x3] ss:$4 sm:$0xff] %v367_v7  ;;  %615 = vmatpush.msra.mxu3 %v424_v9  ;;  %s1429_s21 = smov 112   ;;  %vm501_vm8 = vcmask 123904  }
  0x78   : > { %449 = vmatpush.msra.mxu1 %v423_v10  ;;  %533 = vmatpush.msra.mxu2 %v423_v10  ;;  %s970_s1 = smul.u32 6, %s1895_s8  ;;  %v475_v23 = vld [vmem:[#allocation4] sm:$0x3]  ;;  %s973_s24 = sshll.u32 %s1895_s8, 1 }
  0x79   : > { %406 = vmatpush.msra.mxu0 %v368_v8  ;;  %971 = vmatmul.msk.f32.vlgmr.msra.gmra.mxu1 %vm430_vm1, %v429_v11  ;;  %s857_s25 = scalar_lea.vmem [#allocation2], %s973_s24  ;;  %s860_s29 = scalar_lea.vmem %s1689_s7, %s973_s24 [#allocation11] }
  0x7a   : > { %616 = vmatpush.msra.mxu3 %v423_v10  ;;  %699 = vmatpush.msrb.mxu1 %v424_v9  ;;  %s427_s17 = scalar_lea.vmem [#allocation2], %s970_s1  ;;  %s508_s9 = scalar_lea.vmem %s1689_s7, %s970_s1 [#allocation11] }
  0x7b   : > { %s593_s4 = ssub.s32 2, %s1895_s8  ;;  %s982_s19 = smul.u32 4294967290, %s1895_s8 }
  0x7c   : > { %700 = vmatpush.msrb.mxu1 %v423_v10  ;;  %s1736_s20 = sshll.u32 %s593_s4, 1  ;;  %s1897_s14 = sld [smem:[#allocation19_spill]] }
  0x7d   : > { %s595_s23 = scalar_lea.vmem [#allocation2], %s1736_s20  ;;  %s674_s5 = scalar_lea.vmem %s1689_s7, %s1736_s20 [#allocation11] }
  0x7e   : > { %v387_v12 = vld.sshfl [vmem:[#allocation1] sm:$0xff pattern:$0x73625140]  ;;  %s868_s13 = scalar_lea.vmem [#allocation2], %s982_s19  ;;  %s1898_s4 = sld [smem:[#allocation30_spill]] }
  0x7f   : > { %969 = vmatmul.msk.f32.vlgmr.msra.gmra.mxu0 %vm388_vm2, %v387_v12 }
  0x82   : > { %s989_s18 = sshll.u32 %s1897_s14, 1 }
  0x83   : > { %s769_s1 = ssub.s32 1, %s989_s18 }
  0xf6   : > { %v451_v19 = vpop.f32.mrf.mxu1 }
  0xfc   : > { %v408_v14 = vpop.f32.mrf.mxu0 }
  0xfd   : > { %v409_v15 = vadd.f32 %v1145_v13, %v408_v14 }
  0xff   : > { %v412_v16 = vrot.slane %v409_v15, 2  ;;  %v413_v17 = vrot.slane %v409_v15, 4  ;;  %v414_v18 = vrot.slane %v409_v15, 6  ;;  %419 = vst.msk [vmem:[#allocation2] sm:$0x3] %vm418_vm3, %v409_v15 }
 0x101   : > { %420 = vst.msk [vmem:[#allocation2 + $0x2] sm:$0x3] %vm418_vm3, %v412_v16 }
 0x102   : > { %421 = vst.msk [vmem:[#allocation2 + $0x4] sm:$0x3] %vm418_vm3, %v413_v17 }
 0x103   : > { %422 = vst.msk [vmem:[#allocation2 + $0x6] sm:$0x3] %vm418_vm3, %v414_v18 }
 0x10a   : > { %v428_v20 = vld [vmem:[%s427_s17] sm:$0x3]  ;;  %v974_v50 = vld [vmem:[%s857_s25 + $0x2] sm:$0x3]  ;;  %s770_s17 = smul.u32 %s1895_s8, %s769_s1 }
 0x10b   : > { %v454_v21 = vadd.f32 %v451_v19, %v428_v20  ;;  %v596_v16 = vld [vmem:[%s595_s23] sm:$0x3]  ;;  %s779_s23 = sshll.u32 %s1689_s7, 4  ;;  %s780_s23 = int_to_ptr.vmem [resolvable:$true] %s779_s23 }
 0x10d   : > { %1146 = vtanh.f32 %v454_v21  ;;  %v972_v24 = vmul.f32 -1.442695, %v454_v21 }
 0x10f   : > { %1148 = vpow2.f32 %v972_v24 }
 0x113   : > { %v1147_v22 = vpop.eup %1146 }
 0x114   : > { %482 = vrot.lane.b32.xlu0 %v1147_v22, %s1425_s30 }
 0x115   : > { %v1149_v25 = vpop.eup %1148 }
 0x116   : > { %v458_v26 = vadd.f32 1.0, %v1149_v25 }
 0x118   : > { %1150 = vrcp.f32 %v458_v26  ;;  %v470_v32 = vand.u32 2147483648, %v458_v26  ;;  %vm464_vm5 = vweird.f32 %v458_v26  ;;  %v468_v33 = vand.u32 2147483647, %v458_v26 }
 0x11a   : > { %v471_v35 = vor.u32 1.1754944e-38, %v470_v32  ;;  %vm469_vm7 = vcmp.eq.f32.partialorder %v468_v33, 8.507059e+37 }
 0x11c   : > { %477 = vrot.lane.b32.xlu0 %v475_v23, %s1426_s10 }
 0x11e   : > { %v1151_v27 = vpop.eup %1150 }
 0x11f   : > { %v460_v28 = vmul.f32 %v1151_v27, %v458_v26  ;;  %vm465_vm4 = vweird.f32 %v1151_v27 }
 0x120   : > { %vm466_vm6 = vmor %vm464_vm5, %vm465_vm4 }
 0x121   : > { %v461_v29 = vsub.f32 1.0, %v460_v28 }
 0x123   : > { %v462_v30 = vmul.f32 %v1151_v27, %v461_v29 }
 0x125   : > { %v463_v31 = vadd.f32 %v1151_v27, %v462_v30 }
 0x127   : > { %v467_v34 = vsel %vm466_vm6, %v1151_v27, %v463_v31 }
 0x128   : > { %v472_v37 = vsel %vm469_vm7, %v471_v35, %v467_v34 }
 0x186   : > { %v483_v36 = vpop.permute.xlu0 %482 }
 0x187   : > { %v485_v38 = vmul.f32 %v483_v36, %v472_v37 }
 0x189   : > { %487 = vrot.lane.b32.xlu1 %v485_v38, %s1426_s10 }
 0x18e   : > { %v478_v39 = vpop.permute.xlu0 %477 }
 0x18f   : > { %v480_v40 = vmul.f32 %v478_v39, %v472_v37 }
 0x1fb   : > { %v488_v41 = vpop.permute.xlu1 %487 }
 0x1fc   : > { %v490_v42 = vadd.f32 %v488_v41, %v480_v40 }
 0x1fe   : > { %1152 = vtanh.f32 %v490_v42 }
 0x204   : > { %v1153_v43 = vpop.eup %1152 }
 0x205   : > { %493 = vrot.lane.b32.xlu1 %v1153_v43, %s1427_s12 }
 0x277   : > { %v494_v44 = vpop.permute.xlu1 %493 }
 0x278   : > { %v496_v45 = vmul.f32 %v494_v44, %v472_v37 }
 0x27a   : > { %504 = vrot.lane.b32.xlu2 %v496_v45, %s1428_s6 }
 0x282   : > { %498 = vrot.lane.b32.xlu2 %v490_v42, %s1429_s21 }
 0x2d4   : > { %v505_v46 = vpop.permute.xlu2 %504 }
 0x2d5   : > { %507 = vst.msk [vmem:[#allocation3] sm:$0x3] %vm501_vm8, %v505_v46 }
 0x2d6   : > { %509 = vst.msk [vmem:[%s508_s9] sm:$0x3] %vm501_vm8, %v505_v46  ;;  %v983_v46 = vld [vmem:[%s868_s13 + $0x6] sm:$0x3]  ;;  %s872_s13 = scalar_lea.vmem %s1689_s7, %s982_s19 [#allocation11]  ;;  %s1288_s7 = scalar_lea.hbm %s1898_s4, 32 }
 0x2dc   : > { %v499_v47 = vpop.permute.xlu2 %498  ;;  %v514_v48 = vld [vmem:[#allocation3] sm:$0x3] }
 0x2dd   : > { %502 = vst.msk [vmem:[#allocation4] sm:$0x3] %vm501_vm8, %v499_v47  ;;  %975 = vmatmul.msk.f32.vlgmr.msra.gmra.mxu2 %vm430_vm1, %v514_v48 }
 0x2e4   : > { %v559_v49 = vld [vmem:[#allocation4] sm:$0x3] }
 0x2e5   : > { %561 = vrot.lane.b32.xlu1 %v559_v49, %s1426_s10 }
 0x357   : > { %v562_v5 = vpop.permute.xlu1 %561 }
 0x360   : > { %v535_v51 = vpop.f32.mrf.mxu2 }
 0x361   : > { %v538_v52 = vadd.f32 %v974_v50, %v535_v51 }
 0x363   : > { %1154 = vtanh.f32 %v538_v52  ;;  %v976_v54 = vmul.f32 -1.442695, %v538_v52 }
 0x365   : > { %1156 = vpow2.f32 %v976_v54 }
 0x369   : > { %v1155_v53 = vpop.eup %1154 }
 0x36a   : > { %566 = vrot.lane.b32.xlu0 %v1155_v53, %s1425_s30 }
 0x36b   : > { %v1157_v55 = vpop.eup %1156 }
 0x36c   : > { %v542_v56 = vadd.f32 1.0, %v1157_v55 }
 0x36e   : > { %1158 = vrcp.f32 %v542_v56  ;;  %v554_v62 = vand.u32 2147483648, %v542_v56  ;;  %vm548_vm10 = vweird.f32 %v542_v56  ;;  %v552_v63 = vand.u32 2147483647, %v542_v56 }
 0x370   : > { %v555_v1 = vor.u32 1.1754944e-38, %v554_v62  ;;  %vm553_vm12 = vcmp.eq.f32.partialorder %v552_v63, 8.507059e+37 }
 0x374   : > { %v1159_v57 = vpop.eup %1158 }
 0x375   : > { %v544_v58 = vmul.f32 %v1159_v57, %v542_v56  ;;  %vm549_vm9 = vweird.f32 %v1159_v57 }
 0x376   : > { %vm550_vm11 = vmor %vm548_vm10, %vm549_vm9 }
 0x377   : > { %v545_v59 = vsub.f32 1.0, %v544_v58 }
 0x379   : > { %v546_v60 = vmul.f32 %v1159_v57, %v545_v59 }
 0x37b   : > { %v547_v61 = vadd.f32 %v1159_v57, %v546_v60 }
 0x37d   : > { %v551_v0 = vsel %vm550_vm11, %v1159_v57, %v547_v61 }
 0x37e   : > { %v556_v3 = vsel %vm553_vm12, %v555_v1, %v551_v0 }
 0x37f   : > { %v564_v6 = vmul.f32 %v562_v5, %v556_v3 }
 0x3dc   : > { %v567_v2 = vpop.permute.xlu0 %566 }
 0x3dd   : > { %v569_v4 = vmul.f32 %v567_v2, %v556_v3 }
 0x3df   : > { %571 = vrot.lane.b32.xlu2 %v569_v4, %s1426_s10 }
 0x439   : > { %v572_v7 = vpop.permute.xlu2 %571 }
 0x43a   : > { %v574_v8 = vadd.f32 %v572_v7, %v564_v6 }
 0x43c   : > { %1160 = vtanh.f32 %v574_v8  ;;  %582 = vrot.lane.b32.xlu2 %v574_v8, %s1429_s21 }
 0x442   : > { %v1161_v9 = vpop.eup %1160 }
 0x443   : > { %577 = vrot.lane.b32.xlu0 %v1161_v9, %s1427_s12 }
 0x496   : > { %v583_v10 = vpop.permute.xlu2 %582 }
 0x497   : > { %585 = vst.msk [vmem:[#allocation4] sm:$0x3] %vm501_vm8, %v583_v10 }
 0x49e   : > { %v642_v13 = vld [vmem:[#allocation4] sm:$0x3] }
 0x4b5   : > { %v578_v11 = vpop.permute.xlu0 %577 }
 0x4b6   : > { %v580_v12 = vmul.f32 %v578_v11, %v556_v3 }
 0x4b8   : > { %587 = vrot.lane.b32.xlu1 %v580_v12, %s1428_s6 }
 0x4c0   : > { %644 = vrot.lane.b32.xlu1 %v642_v13, %s1426_s10 }
 0x52a   : > { %v588_v14 = vpop.permute.xlu1 %587 }
 0x52b   : > { %590 = vst.msk [vmem:[#allocation3] sm:$0x3] %vm501_vm8, %v588_v14 }
 0x52c   : > { %978 = vst.msk [vmem:[%s860_s29 + $0x2] sm:$0x3] %vm501_vm8, %v588_v14 }
 0x532   : > { %v597_v15 = vld [vmem:[#allocation3] sm:$0x3]  ;;  %v645_v35 = vpop.permute.xlu1 %644 }
 0x533   : > { %980 = vmatmul.msk.f32.vlgmr.msra.gmra.mxu3 %vm430_vm1, %v597_v15 }
 0x5b6   : > { %v618_v17 = vpop.f32.mrf.mxu3 }
 0x5b7   : > { %v621_v18 = vadd.f32 %v618_v17, %v596_v16 }
 0x5b9   : > { %1162 = vtanh.f32 %v621_v18  ;;  %v981_v20 = vmul.f32 -1.442695, %v621_v18 }
 0x5bb   : > { %1164 = vpow2.f32 %v981_v20 }
 0x5bf   : > { %v1163_v19 = vpop.eup %1162 }
 0x5c0   : > { %649 = vrot.lane.b32.xlu0 %v1163_v19, %s1425_s30 }
 0x5c1   : > { %v1165_v21 = vpop.eup %1164 }
 0x5c2   : > { %v625_v22 = vadd.f32 1.0, %v1165_v21 }
 0x5c4   : > { %1166 = vrcp.f32 %v625_v22  ;;  %v637_v28 = vand.u32 2147483648, %v625_v22  ;;  %vm631_vm14 = vweird.f32 %v625_v22  ;;  %v635_v29 = vand.u32 2147483647, %v625_v22 }
 0x5c6   : > { %v638_v31 = vor.u32 1.1754944e-38, %v637_v28  ;;  %vm636_vm0 = vcmp.eq.f32.partialorder %v635_v29, 8.507059e+37 }
 0x5ca   : > { %v1167_v23 = vpop.eup %1166 }
 0x5cb   : > { %v627_v24 = vmul.f32 %v1167_v23, %v625_v22  ;;  %vm632_vm13 = vweird.f32 %v1167_v23 }
 0x5cc   : > { %vm633_vm15 = vmor %vm631_vm14, %vm632_vm13 }
 0x5cd   : > { %v628_v25 = vsub.f32 1.0, %v627_v24 }
 0x5cf   : > { %v629_v26 = vmul.f32 %v1167_v23, %v628_v25 }
 0x5d1   : > { %v630_v27 = vadd.f32 %v1167_v23, %v629_v26 }
 0x5d3   : > { %v634_v30 = vsel %vm633_vm15, %v1167_v23, %v630_v27 }
 0x5d4   : > { %v639_v33 = vsel %vm636_vm0, %v638_v31, %v634_v30 }
 0x5d5   : > { %v647_v36 = vmul.f32 %v645_v35, %v639_v33 }
 0x632   : > { %v650_v32 = vpop.permute.xlu0 %649 }
 0x633   : > { %v652_v34 = vmul.f32 %v650_v32, %v639_v33 }
 0x635   : > { %654 = vrot.lane.b32.xlu2 %v652_v34, %s1426_s10 }
 0x68f   : > { %v655_v37 = vpop.permute.xlu2 %654 }
 0x690   : > { %v657_v38 = vadd.f32 %v655_v37, %v647_v36 }
 0x692   : > { %1168 = vtanh.f32 %v657_v38  ;;  %665 = vrot.lane.b32.xlu2 %v657_v38, %s1429_s21 }
 0x698   : > { %v1169_v39 = vpop.eup %1168 }
 0x699   : > { %660 = vrot.lane.b32.xlu0 %v1169_v39, %s1427_s12 }
 0x6ec   : > { %v666_v40 = vpop.permute.xlu2 %665 }
 0x6ed   : > { %668 = vst.msk [vmem:[#allocation4] sm:$0x3] %vm501_vm8, %v666_v40 }
 0x6f4   : > { %v726_v43 = vld [vmem:[#allocation4] sm:$0x3] }
 0x70b   : > { %v661_v41 = vpop.permute.xlu0 %660 }
 0x70c   : > { %v663_v42 = vmul.f32 %v661_v41, %v639_v33 }
 0x70e   : > { %670 = vrot.lane.b32.xlu1 %v663_v42, %s1428_s6 }
 0x716   : > { %728 = vrot.lane.b32.xlu1 %v726_v43, %s1426_s10 }
 0x780   : > { %v671_v44 = vpop.permute.xlu1 %670 }
 0x781   : > { %673 = vst.msk [vmem:[#allocation3] sm:$0x3] %vm501_vm8, %v671_v44 }
 0x782   : > { %675 = vst.msk [vmem:[%s674_s5] sm:$0x3] %vm501_vm8, %v671_v44 }
 0x788   : > { %v681_v45 = vld [vmem:[#allocation3] sm:$0x3]  ;;  %v729_v1 = vpop.permute.xlu1 %728 }
 0x789   : > { %984 = vmatmul.msk.f32.vlgmr.msrb.gmra.mxu1 %vm430_vm1, %v681_v45 }
 0x806   : > { %v702_v47 = vpop.f32.mrf.mxu1 }
 0x807   : > { %v705_v48 = vadd.f32 %v983_v46, %v702_v47 }
 0x809   : > { %1170 = vtanh.f32 %v705_v48  ;;  %v985_v50 = vmul.f32 -1.442695, %v705_v48 }
 0x80b   : > { %1172 = vpow2.f32 %v985_v50 }
 0x80f   : > { %v1171_v49 = vpop.eup %1170 }
 0x810   : > { %733 = vrot.lane.b32.xlu0 %v1171_v49, %s1425_s30  ;;  %s771_s30 = sadd.s32 %s1897_s14, %s770_s17 }
 0x811   : > { %v1173_v51 = vpop.eup %1172 }
 0x812   : > { %v709_v52 = vadd.f32 1.0, %v1173_v51 }
 0x814   : > { %1174 = vrcp.f32 %v709_v52  ;;  %v721_v58 = vand.u32 2147483648, %v709_v52  ;;  %vm715_vm2 = vweird.f32 %v709_v52  ;;  %v719_v59 = vand.u32 2147483647, %v709_v52 }
 0x816   : > { %v722_v61 = vor.u32 1.1754944e-38, %v721_v58  ;;  %vm720_vm4 = vcmp.eq.f32.partialorder %v719_v59, 8.507059e+37 }
 0x81a   : > { %v1175_v53 = vpop.eup %1174 }
 0x81b   : > { %v711_v54 = vmul.f32 %v1175_v53, %v709_v52  ;;  %vm716_vm1 = vweird.f32 %v1175_v53 }
 0x81c   : > { %vm717_vm3 = vmor %vm715_vm2, %vm716_vm1 }
 0x81d   : > { %v712_v55 = vsub.f32 1.0, %v711_v54 }
 0x81f   : > { %v713_v56 = vmul.f32 %v1175_v53, %v712_v55 }
 0x821   : > { %v714_v57 = vadd.f32 %v1175_v53, %v713_v56 }
 0x823   : > { %v718_v60 = vsel %vm717_vm3, %v1175_v53, %v714_v57 }
 0x824   : > { %v723_v63 = vsel %vm720_vm4, %v722_v61, %v718_v60 }
 0x825   : > { %v731_v2 = vmul.f32 %v729_v1, %v723_v63 }
 0x882   : > { %v734_v62 = vpop.permute.xlu0 %733 }
 0x883   : > { %v736_v0 = vmul.f32 %v734_v62, %v723_v63 }
 0x885   : > { %738 = vrot.lane.b32.xlu2 %v736_v0, %s1426_s10  ;;  %s990_s10 = sshll.u32 %s771_s30, 2 }
 0x8df   : > { %v739_v3 = vpop.permute.xlu2 %738 }
 0x8e0   : > { %v741_v4 = vadd.f32 %v739_v3, %v731_v2 }
 0x8e2   : > { %1176 = vtanh.f32 %v741_v4  ;;  %749 = vrot.lane.b32.xlu2 %v741_v4, %s1429_s21  ;;  %s991_s21 = sshll.u32 %s1895_s8, 3 }
 0x8e3   : > { %s776_s9 = sadd.s32 %s991_s21, %s990_s10 }
 0x8e4   : > { %s992_s24 = sshll.u32 %s776_s9, 1 }
 0x8e5   : > { %s778_s20 = scalar_lea.hbm %s1898_s4, %s992_s24 }
 0x8e6   : > { %s781_s5 = sshll.u32 %s778_s20, 4  ;;  %s782_s5 = int_to_ptr.hbm [resolvable:$true] %s781_s5 }
 0x8e7   : > { %s1282_s14 = sshra.s32 %s782_s5, 4  ;;  %s1283_s14 = int_to_ptr.hbm [resolvable:$true] %s1282_s14 }
 0x8e8   : > { %v1177_v5 = vpop.eup %1176  ;;  %s1284_s18 = scalar_lea.hbm %s1283_s14, 8  ;;  %p1289_p0 = scmp.lt.s32.totalorder %s1283_s14, %s1898_s4 }
 0x8e9   : > { %744 = vrot.lane.b32.xlu0 %v1177_v5, %s1427_s12  ;;  %p1285_p7 = scmp.ne.s32.totalorder %s1283_s14, %s1284_s18  ;;  %p1290_p9 = scmp.lt.s32.totalorder %s1288_s7, %s1284_s18 }
 0x8eb   : > { %p1286_p10 = pnand %p1285_p7, %p1622_p3  ;;  %p1291_p11 = por %p1290_p9, %p1289_p0 }
 0x8ed   : > { %p1287_p5 = pneg %p1286_p10 }
 0x8ef   : > { %p1292_p1 = pnand %p1291_p11, %p1287_p5 }
 0x93c   : > { %v750_v6 = vpop.permute.xlu2 %749 }
 0x93d   : > { %752 = vst.msk [vmem:[#allocation4] sm:$0x3] %vm501_vm8, %v750_v6 }
 0x95b   : > { %v745_v7 = vpop.permute.xlu0 %744 }
 0x95c   : > { %v747_v8 = vmul.f32 %v745_v7, %v723_v63 }
 0x95e   : > { %754 = vrot.lane.b32.xlu1 %v747_v8, %s1428_s6  ;;  %s761_s6 = scalar_lea.sflag [#allocation7], %s341_s11 }
 0x9d0   : > { %v755_v9 = vpop.permute.xlu1 %754 }
 0x9d1   : > { %757 = vst.msk [vmem:[#allocation3] sm:$0x3] %vm501_vm8, %v755_v9 }
 0x9d2   : > { %987 = vst.msk [vmem:[%s872_s13 + $0x6] sm:$0x3] %vm501_vm8, %v755_v9 }
 0x9d3   : > { %1295 = shalt.err (!%p1292_p1)
}
 0x9d4   : > { %s1430_s11 = smov 2  }
 0x9d5   : > { %1004 = dma.vmem_to_hbm [thread:$0]  (%p1622_p3), %s780_s23, 128, %s782_s5, %s761_s6, %s1427_s12, %s1427_s12, %s1430_s11  }
 0x9d6 PF: > { %p1021_p12 = scmp.ge.s32.totalorder %s1418_s28, 2  ;;  %s796_s30 = sand.u32 1, %s1366_s15  }
 0x9d7   : > { %p1899_p2 = scmp.ne.s32.totalorder %s1885_s3, 0  ;;  %s797_s10 = scalar_lea.sflag [#allocation7], %s796_s30 }
 0x9d9   : > { %p1017_p13 = pnand %p1021_p12, %p1899_p2 }
 0x9db   : > { %p1018_p8 = pneg %p1017_p13 }
 0x9dd   : > { %1361 = dma.done.wait (%p1018_p8), %s797_s10, 128  }
 0x9de   : > { %1363 = vsyncadd (%p1018_p8), %s797_s10, 4294967168  ;;  %s23_s28 = sadd.s32 1, %s1418_s28   ;;  %s1901_s26 = sld [smem:[#allocation15_spill]] }
 0x9df   : > { %p1792_p4 = scmp.ge.s32.totalorder %s23_s28, 6   ;;  %s1902_s17 = sld [smem:[#allocation27_spill]] }
 0x9e0   : > { %s1903_s18 = sld [smem:[#allocation16_spill]]  ;;  %s1912_s15 = smov %s1370_s16 }
 0x9e1   : > { %s1904_s19 = sld [smem:[#allocation17_spill]]  ;;  %s1914_s21 = smov %s1394_s22 }
 0x9e2   : > { %s1905_s20 = sld [smem:[#allocation25_spill]]  ;;  %s1916_s25 = smov %s1414_s27 }
 0x9e3   : > { %s1906_s12 = sld [smem:[#allocation18_spill]] }
 0x9e4   : > { %s1907_s23 = sld [smem:[#allocation26_spill]]  ;;  %s1913_s16 = smov %s1901_s26 }
 0x9e5   : > { %s1908_s24 = sld [smem:[#allocation21_spill]] }
 0x9e6   : > { %s1909_s3 = sld [smem:[#allocation23_spill]] }
 0x9e7   : > { %s1910_s9 = sld [smem:[#allocation24_spill]] }
 0x9e9   : > { %s1915_s22 = smov %s1906_s12  ;;  %22 = sbr.rel (!%p1792_p4) target bundleno = 16 (0x10), region = 123 }
 0x9ec   : > { %s1917_s26 = smov %s1909_s3 }
 0x9ed   : > { %s1918_s27 = smov %s1910_s9 }
 0x9ee   :  { %803 = vsyncpa [#allocation6], 1 }
 0x9ef   :  { %805 = vsyncpa [#allocation6 + $0x1], 1 }
 0x9f0   :  { %806 = vsyncpa [#allocation9], 1 }
 0x9f1   :  { %808 = vsyncpa [#allocation9 + $0x1], 1 }
 0x9f2   :  { %809 = vsyncpa [#allocation7], 1 }
 0x9f3   :  { %811 = vsyncpa [#allocation7 + $0x1], 1 }

</bundles_post_ra>
